<compile_context>
chip_gen: v7x
topology: tpu7x:2x2x1
jax: 0.10.0
libtpu: 0.0.40
codegen_flags: <defaults>
</compile_context>

<pallas_src>
import functools
import numpy as np

import jax
import jax.numpy as jnp
from jax.experimental import pallas as pl
from jax.experimental.pallas import tpu as pltpu

MANTISA_BIT = 8                      # mantissa bits of the BFP activation format
_QMAX = 2.0 ** (MANTISA_BIT - 1) - 1.0
_QMIN = -(2.0 ** (MANTISA_BIT - 1))


# --------------------------------------------------------------------------- #
# Kernel
# --------------------------------------------------------------------------- #
def _inverted_residual_kernel(x_ref, w1_ref, wdw_ref, hid_ref, w3_ref, op_ref,
                              o_ref, *, chid, stride, use_res):
    xp = x_ref[0]                                   # (H, Nb*W*Cin) f32, lane-dense
    H = xp.shape[0]
    lw_hid = w1_ref.shape[1]

    # ---- stage 1: 1x1 expansion (f32 MXU).  is1 is folded into w1/b1, so q1 is in
    # integer-mantissa units; ReLU6 is merged into the clip upper bound (hid row 1).
    q1 = (jnp.dot(xp, w1_ref[...], preferred_element_type=jnp.float32)
          + hid_ref[pl.ds(0, 1), :])
    h_int = jnp.clip(jnp.round(q1), 0.0, hid_ref[pl.ds(1, 1), :])   # (H, Nb*W*Chid)

    # ---- stage 2: 3x3 depthwise, pad=1, as 9 rolled taps (XLU) of h_int.
    # s1 (input scale), is2 (output quant) and the left/right image-boundary masks
    # are folded into wdw_ref; only the two row-boundary taps need a where-mask.
    row_ids = jax.lax.broadcasted_iota(jnp.int32, (H, 1), 0)
    acc = jnp.zeros_like(h_int)
    for kh in range(3):
        if kh == 0:        # tap reads input row h-1; row 0 is zero padding
            rt = jnp.where(row_ids == 0, 0.0, pltpu.roll(h_int, 1, axis=0))
        elif kh == 2:      # tap reads input row h+1; row H-1 is zero padding
            rt = jnp.where(row_ids == H - 1, 0.0, pltpu.roll(h_int, H - 1, axis=0))
        else:
            rt = h_int
        for kw in range(3):
            if kw == 0:      # reads column w-1 (per-lane edge mask baked into weight)
                tap = pltpu.roll(rt, chid, axis=1)
            elif kw == 2:    # reads column w+1
                tap = pltpu.roll(rt, lw_hid - chid, axis=1)
            else:
                tap = rt
            acc = acc + tap * wdw_ref[pl.ds(kh * 3 + kw, 1), :]

    if stride > 1:
        # Row subsample only; the lane (column-w) subsample is folded into w3_ref.
        # TODO(synk): compute only the strided output rows of the depthwise to save
        # ~stride x of the VPU work (not exercised by the test config).
        acc = acc[::stride, :]

    q2 = acc + hid_ref[pl.ds(2, 1), :]
    g_int = jnp.clip(jnp.round(q2), 0.0, hid_ref[pl.ds(3, 1), :])   # (Hout, Nb*W*Chid)

    # ---- stage 3: 1x1 projection (bf16 MXU: g_int integer mantissas are exact in
    # bf16; s2/is3 and the stride lane selection are folded into w3_ref/b3).
    q3 = (jnp.dot(g_int.astype(jnp.bfloat16), w3_ref[...],
                  preferred_element_type=jnp.float32)
          + op_ref[pl.ds(0, 1), :])
    y_int = jnp.clip(jnp.round(q3), _QMIN, _QMAX)                   # (Hout, Nb*Wout*Cout)

    if use_res:
        # Residual: the module quantizes the raw input with the OUTPUT exponent list;
        # stride==1 and Cin==Cout so the packed is3/s3 lane layout matches the input.
        x_int = jnp.clip(jnp.round(xp * op_ref[pl.ds(1, 1), :]), _QMIN, _QMAX)
        y_int = y_int + x_int

    o_ref[0] = y_int * op_ref[pl.ds(2, 1), :]       # single shared *s3, lane-dense store


# --------------------------------------------------------------------------- #
# Parameter packing (once, outside the kernel)
# --------------------------------------------------------------------------- #
def pack_inverted_residual_params(raw_params, *, H, W, stride, images_per_step):
    (w1, b1, s1, wdw, b2, s2, w3, b3, s3) = [np.asarray(p, np.float32) for p in raw_params]
    cin, chid = w1.shape
    cout = w3.shape[1]
    nb = images_per_step
    hout = (H - 1) // stride + 1          # pad=1, kernel=3
    wout = (W - 1) // stride + 1
    lw_hid, lw_out = nb * W * chid, nb * wout * cout

    s1, s2, s3 = s1.reshape(-1), s2.reshape(-1), s3.reshape(-1)
    b1, b2, b3 = b1.reshape(-1), b2.reshape(-1), b3.reshape(-1)
    is1, is2, is3 = 1.0 / s1, 1.0 / s2, 1.0 / s3    # exact (power-of-two scales)

    # Merging ReLU6 into the quant clip is exact when 6/scale is an integer (or the
    # mantissa bound already binds).
    for inv in (is1, is2):
        six = 6.0 * inv
        assert np.all((six >= _QMAX) | (np.round(six) == six)), "ReLU6 merge not exact"

    def lanes(v, reps):                   # per-channel vector -> (1, reps*C) lane layout
        return np.tile(np.asarray(v, np.float32).reshape(1, -1), (1, reps))

    # Stage 1: fold is1 into the expansion weight/bias -> integer-mantissa output.
    # TODO(synk): for real MobileNet spatial sizes (W=56/112) this W^2-scaling kron
    # must be W-tiled (or fall back to plain (H*W,C) matmuls once C >= ~128).
    w1_big = np.kron(np.eye(nb * W, dtype=np.float32), w1 * is1).astype(np.float32)

    # Stage 2: fold s1 (input mantissa scale), is2 (output quant) and the left/right
    # image-boundary zeroing into the 9 per-lane depthwise tap weights.
    wdw_p = np.tile(wdw * (s1 * is2), (1, nb * W)).astype(np.float32)       # (9, lw_hid)
    lane_w = (np.arange(lw_hid) // chid) % W
    for kh in range(3):
        wdw_p[3 * kh + 0] *= (lane_w != 0).astype(np.float32)       # kw=0 reads w-1
        wdw_p[3 * kh + 2] *= (lane_w != W - 1).astype(np.float32)   # kw=2 reads w+1

    hid_params = np.concatenate(
        [lanes(b1 * is1, nb * W), lanes(np.minimum(_QMAX, 6.0 * is1), nb * W),
         lanes(b2 * is2, nb * W), lanes(np.minimum(_QMAX, 6.0 * is2), nb * W)], axis=0)

    # Stage 3: fold s2 (input scale), is3 (output quant) and the stride-w lane
    # selection into the block 1x1 projection weight; cast to bf16 for the MXU.
    w3_eff = (s2[:, None] * w3 * is3[None, :]).astype(np.float32)
    w3_big = np.zeros((lw_hid, lw_out), np.float32)
    for b in range(nb):
        for wo in range(wout):
            r0 = (b * W + wo * stride) * chid
            c0 = (b * wout + wo) * cout
            w3_big[r0:r0 + chid, c0:c0 + cout] = w3_eff

    out_params = np.concatenate(
        [lanes(b3 * is3, nb * wout), lanes(is3, nb * wout), lanes(s3, nb * wout)], axis=0)

    packed = (jnp.asarray(w1_big),
              jnp.asarray(wdw_p),
              jnp.asarray(hid_params),
              jnp.asarray(w3_big).astype(jnp.bfloat16),
              jnp.asarray(out_params))
    dims = dict(cin=cin, chid=chid, cout=cout, hout=hout, wout=wout, nb=nb)
    return packed, dims


def pick_images_per_step(N, W, cin, lane_target=128):
    """Smallest Nb dividing N with Nb*W*cin >= lane_target (lane-dense), capped at N."""
    nb = min(N, max(1, -(-lane_target // (W * cin))))
    while N % nb:
        nb -= 1
    return nb


# --------------------------------------------------------------------------- #
# Wrapper: lane packing + pallas_call
# --------------------------------------------------------------------------- #
def inverted_residual(x_nhwc, packed, dims, *, stride, use_res):
    """x_nhwc: (N, H, W, Cin) float32 -> (N, Hout, Wout, Cout) float32."""
    cin, chid, cout = dims["cin"], dims["chid"], dims["cout"]
    hout, wout, nb = dims["hout"], dims["wout"], dims["nb"]
    N, H, W, _ = x_nhwc.shape
    G = N // nb
    lw_in, lw_out = nb * W * cin, nb * wout * cout

    # Lane-pack nb images side by side (layout plumbing done once by XLA).
    x_slab = (x_nhwc.reshape(G, nb, H, W, cin)
                    .transpose(0, 2, 1, 3, 4)
                    .reshape(G, H, lw_in))

    kernel = functools.partial(_inverted_residual_kernel,
                               chid=chid, stride=stride, use_res=use_res)

    def const_spec(a):
        nd = a.ndim
        # TODO(synk): mark these pipeline_mode=pl.Buffered(1) (constant index_map,
        # never re-fetched) to single-buffer resident weights on v7x's 64 MiB VMEM.
        return pl.BlockSpec(a.shape, lambda g, _nd=nd: (0,) * _nd)

    # Explicit VMEM budget derived from the actual packed sizes (double-buffered
    # params + pipelined input/output blocks) with generous headroom.
    param_bytes = sum(int(np.prod(a.shape)) * a.dtype.itemsize for a in packed)
    io_bytes = (H * lw_in + hout * lw_out) * 4
    vmem_limit = int(min(max(4 * param_bytes + 8 * io_bytes, 4 << 20), 32 << 20))

    out = pl.pallas_call(
        kernel,
        out_shape=jax.ShapeDtypeStruct((G, hout, lw_out), jnp.float32),
        grid_spec=pltpu.PrefetchScalarGridSpec(
            num_scalar_prefetch=0,
            grid=(G,),
            in_specs=[pl.BlockSpec((1, H, lw_in), lambda g: (g, 0, 0))]
                     + [const_spec(a) for a in packed],
            out_specs=pl.BlockSpec((1, hout, lw_out), lambda g: (g, 0, 0)),
        ),
        compiler_params=pltpu.CompilerParams(
            dimension_semantics=("parallel",),
            vmem_limit_bytes=vmem_limit),
    )(x_slab, *packed)

    return (out.reshape(G, hout, nb, wout, cout)
               .transpose(0, 2, 1, 3, 4)
               .reshape(N, hout, wout, cout))


# --------------------------------------------------------------------------- #
# Pure-JAX NHWC reference (f32, unfolded math) for correctness checking
# --------------------------------------------------------------------------- #
def _bfp_quant_ref(v, scale):
    # TODO(synk): BFPActivation.transform_activation_offline source was not provided;
    # approximated as per-channel shared-exponent mantissa quantization (round + clip).
    return jnp.clip(jnp.round(v / scale), _QMIN, _QMAX) * scale


def ref_forward(x_nhwc, raw_params, *, stride, use_res):
    (w1, b1, s1, wdw, b2, s2, w3, b3, s3) = raw_params
    N, H, W, Cin = x_nhwc.shape
    h = jnp.einsum('nhwc,cd->nhwd', x_nhwc, w1,
                   preferred_element_type=jnp.float32) + b1
    h = jnp.clip(_bfp_quant_ref(h, s1), 0.0, 6.0)
    hp = jnp.pad(h, ((0, 0), (1, 1), (1, 1), (0, 0)))
    acc = 0.0
    for kh in range(3):
        for kw in range(3):
            acc = acc + (hp[:, kh:kh + H, kw:kw + W, :][:, ::stride, ::stride, :]
                         * wdw[kh * 3 + kw])
    g = jnp.clip(_bfp_quant_ref(acc + b2, s2), 0.0, 6.0)
    y = _bfp_quant_ref(jnp.einsum('nhwd,de->nhwe', g, w3,
                                  preferred_element_type=jnp.float32) + b3, s3)
    if use_res:
        y = y + _bfp_quant_ref(x_nhwc, s3)
    return y


if __name__ == "__main__":
    # Module config: stride==1 and inp==oup -> the residual path is exercised.
    inp, oup, stride, expand_ratio = 4, 4, 1, 2
    N, H, W = 2, 16, 16
    chid = inp * expand_ratio
    use_res = (stride == 1 and inp == oup)

    key = jax.random.PRNGKey(0)
    ks = jax.random.split(key, 7)

    # PyTorch layouts converted for NHWC compute:
    #   1x1 conv (out,in,1,1) -> (in,out); depthwise (C,1,3,3) -> (9,C); bias -> (1,C)
    w1 = jax.random.normal(ks[0], (inp, chid), jnp.float32) * 0.3
    b1 = jax.random.normal(ks[1], (1, chid), jnp.float32) * 0.1
    wdw = jax.random.normal(ks[2], (9, chid), jnp.float32) * 0.3
    b2 = jax.random.normal(ks[3], (1, chid), jnp.float32) * 0.1
    w3 = jax.random.normal(ks[4], (chid, oup), jnp.float32) * 0.3
    b3 = jax.random.normal(ks[5], (1, oup), jnp.float32) * 0.1

    # Deterministic per-channel shared BFP exponents (stand-in for opt_exp_act_list).
    e1 = 2.0 + (jnp.arange(chid, dtype=jnp.float32).reshape(1, chid) % 2)
    e2 = 2.0 + (jnp.arange(chid, dtype=jnp.float32).reshape(1, chid) % 2)
    e3 = 2.0 + (jnp.arange(oup, dtype=jnp.float32).reshape(1, oup) % 2)
    s1 = 2.0 ** (e1 - (MANTISA_BIT - 1))
    s2 = 2.0 ** (e2 - (MANTISA_BIT - 1))
    s3 = 2.0 ** (e3 - (MANTISA_BIT - 1))

    raw_params = (w1, b1, s1, wdw, b2, s2, w3, b3, s3)

    # Input in PyTorch NCHW convention, transposed once to NHWC for the kernel.
    x_nchw = jax.random.normal(ks[6], (N, inp, H, W), jnp.float32)
    x_nhwc = jnp.transpose(x_nchw, (0, 2, 3, 1))

    nb = pick_images_per_step(N, W, inp)
    packed, dims = pack_inverted_residual_params(
        raw_params, H=H, W=W, stride=stride, images_per_step=nb)
    out = inverted_residual(x_nhwc, packed, dims, stride=stride, use_res=use_res)
    out = jax.block_until_ready(out)

    ref = ref_forward(x_nhwc, raw_params, stride=stride, use_res=use_res)

    # Tolerance: kernel matches this f32 reference up to a few BFP round-boundary
    # flips (max quant step s3 = 0.0625) coming from the bf16-cast projection weights
    # and MXU/XLA summation reassociation, propagated through the downstream quantizers.
    diff = np.abs(np.asarray(out) - np.asarray(ref))
    np.testing.assert_allclose(np.asarray(out), np.asarray(ref), atol=0.2, rtol=0.0)
    assert float(diff.mean()) < 0.03, diff.mean()

    print("KERNEL_OK")
</pallas_src>

<mosaic_0001>
module attributes {stable_mosaic.version = 11 : i64} {
  func.func @_inverted_residual_kernel(%arg0: i32, %arg1: memref<1x16x128xf32, #tpu.memory_space<vmem>>, %arg2: memref<128x256xf32, #tpu.memory_space<vmem>>, %arg3: memref<9x256xf32, #tpu.memory_space<vmem>>, %arg4: memref<4x256xf32, #tpu.memory_space<vmem>>, %arg5: memref<256x128xbf16, #tpu.memory_space<vmem>>, %arg6: memref<3x128xf32, #tpu.memory_space<vmem>>, %arg7: memref<1x16x128xf32, #tpu.memory_space<vmem>>) attributes {dimension_semantics = [#tpu.dimension_semantics<parallel>], iteration_bounds = array<i64: 1>, scalar_prefetch = 0 : i64, scratch_operands = 0 : i64, tpu.core_type = #tpu.core_type<tc>, window_params = [{transform_indices = @transform_0, window_bounds = array<i64: 1, 16, 128>}, {pipeline_mode = #tpu.pipeline_mode<synchronous>, transform_indices = @transform_1, window_bounds = array<i64: 128, 256>}, {pipeline_mode = #tpu.pipeline_mode<synchronous>, transform_indices = @transform_2, window_bounds = array<i64: 9, 256>}, {pipeline_mode = #tpu.pipeline_mode<synchronous>, transform_indices = @transform_3, window_bounds = array<i64: 4, 256>}, {pipeline_mode = #tpu.pipeline_mode<synchronous>, transform_indices = @transform_4, window_bounds = array<i64: 256, 128>}, {pipeline_mode = #tpu.pipeline_mode<synchronous>, transform_indices = @transform_5, window_bounds = array<i64: 3, 128>}, {transform_indices = @transform_6, window_bounds = array<i64: 1, 16, 128>}]} {
    %c0 = arith.constant 0 : index
    %c0_0 = arith.constant 0 : index
    %c0_1 = arith.constant 0 : index
    %0 = vector.load %arg1[%c0, %c0_0, %c0_1] : memref<1x16x128xf32, #tpu.memory_space<vmem>>, vector<1x16x128xf32>
    %1 = vector.shape_cast %0 : vector<1x16x128xf32> to vector<16x128xf32>
    %c0_2 = arith.constant 0 : index
    %c0_3 = arith.constant 0 : index
    %2 = vector.load %arg2[%c0_2, %c0_3] : memref<128x256xf32, #tpu.memory_space<vmem>>, vector<128x256xf32>
    %cst = arith.constant dense<0.000000e+00> : vector<16x256xf32>
    %3 = tpu.matmul %1, %2, %cst {dimension_numbers = #tpu.dot_dimension_numbers<[1], [0], [0], [1], [0, 0, 1, 1], [], []>} : vector<16x128xf32>, vector<128x256xf32>, vector<16x256xf32> -> vector<16x256xf32>
    %c0_4 = arith.constant 0 : index
    %c0_5 = arith.constant 0 : index
    %4 = vector.load %arg4[%c0_4, %c0_5] : memref<4x256xf32, #tpu.memory_space<vmem>>, vector<1x256xf32>
    %5 = vector.broadcast %4 : vector<1x256xf32> to vector<16x256xf32>
    %6 = arith.addf %3, %5 : vector<16x256xf32>
    %7 = math.roundeven %6 : vector<16x256xf32>
    %c1 = arith.constant 1 : index
    %c0_6 = arith.constant 0 : index
    %8 = vector.load %arg4[%c1, %c0_6] : memref<4x256xf32, #tpu.memory_space<vmem>>, vector<1x256xf32>
    %cst_7 = arith.constant 0.000000e+00 : f32
    %9 = vector.broadcast %cst_7 : f32 to vector<16x256xf32>
    %10 = arith.maximumf %9, %7 : vector<16x256xf32>
    %11 = vector.broadcast %8 : vector<1x256xf32> to vector<16x256xf32>
    %12 = arith.minimumf %11, %10 : vector<16x256xf32>
    %13 = tpu.iota {dimensions = array<i32: 0>} : vector<16x1xi32>
    %cst_8 = arith.constant 0.000000e+00 : f32
    %14 = vector.broadcast %cst_8 : f32 to vector<16x256xf32>
    %c0_i32 = arith.constant 0 : i32
    %15 = vector.broadcast %c0_i32 : i32 to vector<16x1xi32>
    %16 = arith.cmpi eq, %13, %15 : vector<16x1xi32>
    %c1_i32 = arith.constant 1 : i32
    %17 = tpu.dynamic_rotate %12 by %c1_i32 dim 0 : vector<16x256xf32>, i32 -> vector<16x256xf32>
    %cst_9 = arith.constant 0.000000e+00 : f32
    %18 = vector.shape_cast %16 : vector<16x1xi1> to vector<16x1xi1>
    %19 = vector.broadcast %18 : vector<16x1xi1> to vector<16x256xi1>
    %20 = vector.broadcast %cst_9 : f32 to vector<16x256xf32>
    %21 = arith.select %19, %20, %17 : vector<16x256xi1>, vector<16x256xf32>
    %c8_i32 = arith.constant 8 : i32
    %22 = tpu.dynamic_rotate %21 by %c8_i32 dim 1 : vector<16x256xf32>, i32 -> vector<16x256xf32>
    %c0_10 = arith.constant 0 : index
    %c0_11 = arith.constant 0 : index
    %23 = vector.load %arg3[%c0_10, %c0_11] : memref<9x256xf32, #tpu.memory_space<vmem>>, vector<1x256xf32>
    %24 = vector.broadcast %23 : vector<1x256xf32> to vector<16x256xf32>
    %25 = arith.mulf %22, %24 : vector<16x256xf32>
    %26 = arith.addf %14, %25 : vector<16x256xf32>
    %c1_12 = arith.constant 1 : index
    %c0_13 = arith.constant 0 : index
    %27 = vector.load %arg3[%c1_12, %c0_13] : memref<9x256xf32, #tpu.memory_space<vmem>>, vector<1x256xf32>
    %28 = vector.broadcast %27 : vector<1x256xf32> to vector<16x256xf32>
    %29 = arith.mulf %21, %28 : vector<16x256xf32>
    %30 = arith.addf %26, %29 : vector<16x256xf32>
    %c248_i32 = arith.constant 248 : i32
    %31 = tpu.dynamic_rotate %21 by %c248_i32 dim 1 : vector<16x256xf32>, i32 -> vector<16x256xf32>
    %c2 = arith.constant 2 : index
    %c0_14 = arith.constant 0 : index
    %32 = vector.load %arg3[%c2, %c0_14] : memref<9x256xf32, #tpu.memory_space<vmem>>, vector<1x256xf32>
    %33 = vector.broadcast %32 : vector<1x256xf32> to vector<16x256xf32>
    %34 = arith.mulf %31, %33 : vector<16x256xf32>
    %35 = arith.addf %30, %34 : vector<16x256xf32>
    %c8_i32_15 = arith.constant 8 : i32
    %36 = tpu.dynamic_rotate %12 by %c8_i32_15 dim 1 : vector<16x256xf32>, i32 -> vector<16x256xf32>
    %c3 = arith.constant 3 : index
    %c0_16 = arith.constant 0 : index
    %37 = vector.load %arg3[%c3, %c0_16] : memref<9x256xf32, #tpu.memory_space<vmem>>, vector<1x256xf32>
    %38 = vector.broadcast %37 : vector<1x256xf32> to vector<16x256xf32>
    %39 = arith.mulf %36, %38 : vector<16x256xf32>
    %40 = arith.addf %35, %39 : vector<16x256xf32>
    %c4 = arith.constant 4 : index
    %c0_17 = arith.constant 0 : index
    %41 = vector.load %arg3[%c4, %c0_17] : memref<9x256xf32, #tpu.memory_space<vmem>>, vector<1x256xf32>
    %42 = vector.broadcast %41 : vector<1x256xf32> to vector<16x256xf32>
    %43 = arith.mulf %12, %42 : vector<16x256xf32>
    %44 = arith.addf %40, %43 : vector<16x256xf32>
    %c248_i32_18 = arith.constant 248 : i32
    %45 = tpu.dynamic_rotate %12 by %c248_i32_18 dim 1 : vector<16x256xf32>, i32 -> vector<16x256xf32>
    %c5 = arith.constant 5 : index
    %c0_19 = arith.constant 0 : index
    %46 = vector.load %arg3[%c5, %c0_19] : memref<9x256xf32, #tpu.memory_space<vmem>>, vector<1x256xf32>
    %47 = vector.broadcast %46 : vector<1x256xf32> to vector<16x256xf32>
    %48 = arith.mulf %45, %47 : vector<16x256xf32>
    %49 = arith.addf %44, %48 : vector<16x256xf32>
    %c15_i32 = arith.constant 15 : i32
    %50 = vector.broadcast %c15_i32 : i32 to vector<16x1xi32>
    %51 = arith.cmpi eq, %13, %50 : vector<16x1xi32>
    %c15_i32_20 = arith.constant 15 : i32
    %52 = tpu.dynamic_rotate %12 by %c15_i32_20 dim 0 : vector<16x256xf32>, i32 -> vector<16x256xf32>
    %cst_21 = arith.constant 0.000000e+00 : f32
    %53 = vector.shape_cast %51 : vector<16x1xi1> to vector<16x1xi1>
    %54 = vector.broadcast %53 : vector<16x1xi1> to vector<16x256xi1>
    %55 = vector.broadcast %cst_21 : f32 to vector<16x256xf32>
    %56 = arith.select %54, %55, %52 : vector<16x256xi1>, vector<16x256xf32>
    %c8_i32_22 = arith.constant 8 : i32
    %57 = tpu.dynamic_rotate %56 by %c8_i32_22 dim 1 : vector<16x256xf32>, i32 -> vector<16x256xf32>
    %c6 = arith.constant 6 : index
    %c0_23 = arith.constant 0 : index
    %58 = vector.load %arg3[%c6, %c0_23] : memref<9x256xf32, #tpu.memory_space<vmem>>, vector<1x256xf32>
    %59 = vector.broadcast %58 : vector<1x256xf32> to vector<16x256xf32>
    %60 = arith.mulf %57, %59 : vector<16x256xf32>
    %61 = arith.addf %49, %60 : vector<16x256xf32>
    %c7 = arith.constant 7 : index
    %c0_24 = arith.constant 0 : index
    %62 = vector.load %arg3[%c7, %c0_24] : memref<9x256xf32, #tpu.memory_space<vmem>>, vector<1x256xf32>
    %63 = vector.broadcast %62 : vector<1x256xf32> to vector<16x256xf32>
    %64 = arith.mulf %56, %63 : vector<16x256xf32>
    %65 = arith.addf %61, %64 : vector<16x256xf32>
    %c248_i32_25 = arith.constant 248 : i32
    %66 = tpu.dynamic_rotate %56 by %c248_i32_25 dim 1 : vector<16x256xf32>, i32 -> vector<16x256xf32>
    %c8 = arith.constant 8 : index
    %c0_26 = arith.constant 0 : index
    %67 = vector.load %arg3[%c8, %c0_26] : memref<9x256xf32, #tpu.memory_space<vmem>>, vector<1x256xf32>
    %68 = vector.broadcast %67 : vector<1x256xf32> to vector<16x256xf32>
    %69 = arith.mulf %66, %68 : vector<16x256xf32>
    %70 = arith.addf %65, %69 : vector<16x256xf32>
    %c2_27 = arith.constant 2 : index
    %c0_28 = arith.constant 0 : index
    %71 = vector.load %arg4[%c2_27, %c0_28] : memref<4x256xf32, #tpu.memory_space<vmem>>, vector<1x256xf32>
    %72 = vector.broadcast %71 : vector<1x256xf32> to vector<16x256xf32>
    %73 = arith.addf %70, %72 : vector<16x256xf32>
    %74 = math.roundeven %73 : vector<16x256xf32>
    %c3_29 = arith.constant 3 : index
    %c0_30 = arith.constant 0 : index
    %75 = vector.load %arg4[%c3_29, %c0_30] : memref<4x256xf32, #tpu.memory_space<vmem>>, vector<1x256xf32>
    %cst_31 = arith.constant 0.000000e+00 : f32
    %76 = vector.broadcast %cst_31 : f32 to vector<16x256xf32>
    %77 = arith.maximumf %76, %74 : vector<16x256xf32>
    %78 = vector.broadcast %75 : vector<1x256xf32> to vector<16x256xf32>
    %79 = arith.minimumf %78, %77 : vector<16x256xf32>
    %80 = arith.truncf %79 : vector<16x256xf32> to vector<16x256xbf16>
    %c0_32 = arith.constant 0 : index
    %c0_33 = arith.constant 0 : index
    %81 = vector.load %arg5[%c0_32, %c0_33] : memref<256x128xbf16, #tpu.memory_space<vmem>>, vector<256x128xbf16>
    %cst_34 = arith.constant dense<0.000000e+00> : vector<16x128xf32>
    %82 = tpu.matmul %80, %81, %cst_34 {dimension_numbers = #tpu.dot_dimension_numbers<[1], [0], [0], [1], [0, 0, 1, 1], [], []>} : vector<16x256xbf16>, vector<256x128xbf16>, vector<16x128xf32> -> vector<16x128xf32>
    %c0_35 = arith.constant 0 : index
    %c0_36 = arith.constant 0 : index
    %83 = vector.load %arg6[%c0_35, %c0_36] : memref<3x128xf32, #tpu.memory_space<vmem>>, vector<1x128xf32>
    %84 = vector.broadcast %83 : vector<1x128xf32> to vector<16x128xf32>
    %85 = arith.addf %82, %84 : vector<16x128xf32>
    %86 = math.roundeven %85 : vector<16x128xf32>
    %cst_37 = arith.constant -1.280000e+02 : f32
    %cst_38 = arith.constant 1.270000e+02 : f32
    %87 = vector.broadcast %cst_37 : f32 to vector<16x128xf32>
    %88 = arith.maximumf %87, %86 : vector<16x128xf32>
    %89 = vector.broadcast %cst_38 : f32 to vector<16x128xf32>
    %90 = arith.minimumf %89, %88 : vector<16x128xf32>
    %c1_39 = arith.constant 1 : index
    %c0_40 = arith.constant 0 : index
    %91 = vector.load %arg6[%c1_39, %c0_40] : memref<3x128xf32, #tpu.memory_space<vmem>>, vector<1x128xf32>
    %92 = vector.broadcast %91 : vector<1x128xf32> to vector<16x128xf32>
    %93 = arith.mulf %1, %92 : vector<16x128xf32>
    %94 = math.roundeven %93 : vector<16x128xf32>
    %cst_41 = arith.constant -1.280000e+02 : f32
    %cst_42 = arith.constant 1.270000e+02 : f32
    %95 = vector.broadcast %cst_41 : f32 to vector<16x128xf32>
    %96 = arith.maximumf %95, %94 : vector<16x128xf32>
    %97 = vector.broadcast %cst_42 : f32 to vector<16x128xf32>
    %98 = arith.minimumf %97, %96 : vector<16x128xf32>
    %99 = arith.addf %90, %98 : vector<16x128xf32>
    %c2_43 = arith.constant 2 : index
    %c0_44 = arith.constant 0 : index
    %100 = vector.load %arg6[%c2_43, %c0_44] : memref<3x128xf32, #tpu.memory_space<vmem>>, vector<1x128xf32>
    %101 = vector.broadcast %100 : vector<1x128xf32> to vector<16x128xf32>
    %102 = arith.mulf %99, %101 : vector<16x128xf32>
    %c0_45 = arith.constant 0 : index
    %c0_46 = arith.constant 0 : index
    %c0_47 = arith.constant 0 : index
    %103 = vector.load %arg7[%c0_45, %c0_46, %c0_47] : memref<1x16x128xf32, #tpu.memory_space<vmem>>, vector<1x16x128xf32>
    %104 = vector.shape_cast %103 : vector<1x16x128xf32> to vector<16x128xf32>
    %105 = vector.shape_cast %102 : vector<16x128xf32> to vector<1x16x128xf32>
    tpu.vector_store %arg7[%c0_45, %c0_46, %c0_47], %105 {strides = array<i32>} : memref<1x16x128xf32, #tpu.memory_space<vmem>>, vector<1x16x128xf32>,
    return
  }
  func.func @transform_0(%arg0: i32) -> (i32, i32, i32) {
    %c0_i32 = arith.constant 0 : i32
    %c0_i32_0 = arith.constant 0 : i32
    %c0_i32_1 = arith.constant 0 : i32
    return %arg0, %c0_i32, %c0_i32_0 : i32, i32, i32
  }
  func.func @transform_1(%arg0: i32) -> (i32, i32) {
    %c0_i32 = arith.constant 0 : i32
    %c0_i32_0 = arith.constant 0 : i32
    %c0_i32_1 = arith.constant 0 : i32
    return %c0_i32, %c0_i32_0 : i32, i32
  }
  func.func @transform_2(%arg0: i32) -> (i32, i32) {
    %c0_i32 = arith.constant 0 : i32
    %c0_i32_0 = arith.constant 0 : i32
    %c0_i32_1 = arith.constant 0 : i32
    return %c0_i32, %c0_i32_0 : i32, i32
  }
  func.func @transform_3(%arg0: i32) -> (i32, i32) {
    %c0_i32 = arith.constant 0 : i32
    %c0_i32_0 = arith.constant 0 : i32
    %c0_i32_1 = arith.constant 0 : i32
    return %c0_i32, %c0_i32_0 : i32, i32
  }
  func.func @transform_4(%arg0: i32) -> (i32, i32) {
    %c0_i32 = arith.constant 0 : i32
    %c0_i32_0 = arith.constant 0 : i32
    %c0_i32_1 = arith.constant 0 : i32
    return %c0_i32, %c0_i32_0 : i32, i32
  }
  func.func @transform_5(%arg0: i32) -> (i32, i32) {
    %c0_i32 = arith.constant 0 : i32
    %c0_i32_0 = arith.constant 0 : i32
    %c0_i32_1 = arith.constant 0 : i32
    return %c0_i32, %c0_i32_0 : i32, i32
  }
  func.func @transform_6(%arg0: i32) -> (i32, i32, i32) {
    %c0_i32 = arith.constant 0 : i32
    %c0_i32_0 = arith.constant 0 : i32
    %c0_i32_1 = arith.constant 0 : i32
    return %arg0, %c0_i32, %c0_i32_0 : i32, i32, i32
  }
}

</mosaic_0001>

<bundles_post_ra>
// kernel: tpu_custom_call.1
= control target key start
LH: loop header
LB: loop body
LE: loop exit
PB: predicated region body
PF: predicated region fallthrough
CT: control target
= control target key end

     0   :  { %11 = vsyncpa [#allocation3], 0  ;;  %s1431_s0 = inlined_call_operand.hbm [shape: f32[1,16,128], index: 0, kind: input, shape index: {}]   ;;  %s1432_s1 = inlined_call_operand.hbm [shape: f32[128,256], index: 1, kind: input, shape index: {}]   ;;  %s1433_s2 = inlined_call_operand.hbm [shape: f32[9,256], index: 2, kind: input, shape index: {}]   ;;  %s1434_s3 = inlined_call_operand.vmem [shape: f32[4,256], index: 3, kind: input, shape index: {}]   ;;  %s1435_s4 = inlined_call_operand.hbm [shape: bf16[256,128], index: 4, kind: input, shape index: {}]   ;;  %s1436_s5 = inlined_call_operand.vmem [shape: f32[3,128], index: 5, kind: input, shape index: {}]   ;;  %s1437_s6 = inlined_call_operand.hbm [shape: f32[1,16,128], index: 6, kind: output, shape index: {}]  }
   0x1   :  { %12 = vsyncpa [#allocation6], 0 }
   0x2   :  { %13 = vsyncpa [#allocation9], 0 }
   0x3   :  { %14 = vsyncpa [#allocation4], 0  ;;  %s1035_s21 = smov [#allocation5]   ;;  %s917_s25 = scalar_lea.hbm %s1432_s1, 4096 }
   0x4   :  { %s32_s22 = sshll.u32 %s1035_s21, 4  ;;  %p918_p0 = scmp.ne.s32.totalorder %s1432_s1, %s917_s25  ;;  %s33_s22 = int_to_ptr.vmem [resolvable:$true] %s32_s22 }
   0x5   :  { %p921_p1 = scmp.lt.u32.totalorder %s917_s25, %s1432_s1 }
   0x7   :  { %p923_p2 = pnand %p921_p1, %p918_p0 }
   0x9   :  { %926 = shalt.err (!%p923_p2)
}
   0xa   :  { %s927_s30 = scalar_lea.vmem %s33_s22, 4096  ;;  %p932_p4 = scmp.lt.s32.totalorder %s33_s22, %s33_s22 }
   0xb   :  { %p928_p3 = scmp.ne.s32.totalorder %s33_s22, %s927_s30  ;;  %p933_p5 = scmp.lt.s32.totalorder %s927_s30, %s927_s30 }
   0xd   :  { %p934_p6 = por %p933_p5, %p932_p4 }
   0xf   :  { %p935_p7 = pnand %p934_p6, %p928_p3 }
  0x11   :  { %938 = shalt.err (!%p935_p7)
}
  0x12   :  { %s1036_s7 = smov 256   ;;  %s1037_s8 = smov 16  }
  0x13   :  { %38 = dma.hbm_to_vmem [thread:$0]  %s1432_s1, 4096, %s33_s22, [#allocation6], %s1036_s7, %s1036_s7, %s1037_s8  }
  0x14   :  { %s1038_s11 = smov [#allocation2]   ;;  %s939_s15 = scalar_lea.hbm %s1431_s0, 256 }
  0x15   :  { %s20_s12 = sshll.u32 %s1038_s11, 4  ;;  %p940_p8 = scmp.ne.s32.totalorder %s1431_s0, %s939_s15  ;;  %s21_s12 = int_to_ptr.vmem [resolvable:$true] %s20_s12 }
  0x16   :  { %p943_p9 = scmp.lt.u32.totalorder %s939_s15, %s1431_s0 }
  0x18   :  { %p945_p10 = pnand %p943_p9, %p940_p8 }
  0x1a   :  { %948 = shalt.err (!%p945_p10)
}
  0x1b   :  { %s949_s20 = scalar_lea.vmem %s21_s12, 256  ;;  %p954_p12 = scmp.lt.s32.totalorder %s21_s12, %s21_s12 }
  0x1c   :  { %p950_p11 = scmp.ne.s32.totalorder %s21_s12, %s949_s20  ;;  %p955_p13 = scmp.lt.s32.totalorder %s949_s20, %s949_s20 }
  0x1e   :  { %p956_p0 = por %p955_p13, %p954_p12 }
  0x20   :  { %p957_p1 = pnand %p956_p0, %p950_p11 }
  0x22   :  { %960 = shalt.err (!%p957_p1)
}
  0x23   :  { %s1039_s1 = smov 128   ;;  %s1040_s21 = smov 8  }
  0x24   :  { %26 = dma.hbm_to_vmem [thread:$0]  %s1431_s0, 256, %s21_s12, [#allocation3], %s1039_s1, %s1039_s1, %s1040_s21  }
  0x25   :  { %s1041_s24 = smov [#allocation7]   ;;  %s1042_s26 = smov [#allocation8]  }
  0x26   :  { %s44_s25 = sshll.u32 %s1041_s24, 4  ;;  %s58_s27 = sshll.u32 %s1042_s26, 4  ;;  %s45_s25 = int_to_ptr.vmem [resolvable:$true] %s44_s25  ;;  %s1113_s27 = int_to_ptr.vmem [resolvable:$true] %s58_s27 }
  0x27   :  { %s961_s30 = scalar_lea.hbm %s1433_s2, 512 }
  0x28   :  { %p962_p2 = scmp.ne.s32.totalorder %s1433_s2, %s961_s30  ;;  %p965_p3 = scmp.lt.u32.totalorder %s961_s30, %s1433_s2 }
  0x2a   :  { %p967_p4 = pnand %p965_p3, %p962_p2 }
  0x2c   :  { %970 = shalt.err (!%p967_p4)
}
  0x2d   :  { %s971_s0 = scalar_lea.vmem %s45_s25, 512  ;;  %p976_p6 = scmp.lt.s32.totalorder %s45_s25, %s45_s25 }
  0x2e   :  { %p972_p5 = scmp.ne.s32.totalorder %s45_s25, %s971_s0  ;;  %p977_p7 = scmp.lt.s32.totalorder %s971_s0, %s971_s0 }
  0x30   :  { %p978_p8 = por %p977_p7, %p976_p6 }
  0x32   :  { %p979_p9 = pnand %p978_p8, %p972_p5 }
  0x34   :  { %982 = shalt.err (!%p979_p9)
}
  0x35   :  { %50 = dma.hbm_to_vmem [thread:$0]  %s1433_s2, 512, %s45_s25, [#allocation6], %s1036_s7, %s1036_s7, %s1037_s8  }
  0x36   :  { %s983_s17 = scalar_lea.hbm %s1435_s4, 2048 }
  0x37   :  { %p984_p10 = scmp.ne.s32.totalorder %s1435_s4, %s983_s17  ;;  %p987_p11 = scmp.lt.u32.totalorder %s983_s17, %s1435_s4 }
  0x39   :  { %p989_p12 = pnand %p987_p11, %p984_p10 }
  0x3b   :  { %992 = shalt.err (!%p989_p12)
}
  0x3c   :  { %s993_s23 = scalar_lea.vmem %s1113_s27, 2048  ;;  %p998_p0 = scmp.lt.s32.totalorder %s1113_s27, %s1113_s27 }
  0x3d   :  { %p994_p13 = scmp.ne.s32.totalorder %s1113_s27, %s993_s23  ;;  %p999_p1 = scmp.lt.s32.totalorder %s993_s23, %s993_s23 }
  0x3f   :  { %p1000_p2 = por %p999_p1, %p998_p0 }
  0x41   :  { %p1001_p3 = pnand %p1000_p2, %p994_p13 }
  0x43   :  { %1004 = shalt.err (!%p1001_p3)
}
  0x44   :  { %s1043_s2 = smov 64   ;;  %s1044_s7 = smov 4  }
  0x45   :  { %64 = dma.hbm_to_vmem [thread:$0]  %s1435_s4, 2048, %s1113_s27, [#allocation9], %s1043_s2, %s1043_s2, %s1044_s7  }
  0x46   :  { %1027 = dma.done.wait [#allocation3], 256  }
  0x47   :  { %1028 = vsyncadd [#allocation3], 4294967040 }
  0x48   :  { %1029 = dma.done.wait [#allocation6], 4608  }
  0x49   :  { %1030 = vsyncadd [#allocation6], 4294962688 }
  0x4a   :  { %1031 = dma.done.wait [#allocation9], 2048  }
  0x4b   :  { %1032 = vsyncadd [#allocation9], 4294965248  ;;  %v1045_v0 = vmov 0.0   ;;  %v83_v1 = vld [vmem:[#allocation5 + $0x8] sm:$0xff]  ;;  %v85_v2 = vld [vmem:[#allocation5 + $0x18] sm:$0xff]  ;;  %v116_v51 = vlaneseq  ;;  %s1046_s28 = smov 120  }
  0x4c   :  { %190 = vmatprep.mubr.f32.mxu0 %v1045_v0  ;;  %v82_v3 = vld [vmem:[#allocation5] sm:$0xff]  ;;  %v844_v4 = vpack.c.bf16 %v85_v2, %v83_v1  ;;  %v84_v5 = vld [vmem:[#allocation5 + $0x10] sm:$0xff]  ;;  %v87_v6 = vld [vmem:[#allocation5 + $0x28] sm:$0xff]  ;;  %s1047_s15 = smov [#allocation10]  }
  0x4d   :  { %v89_v7 = vld [vmem:[#allocation5 + $0x38] sm:$0xff]  ;;  %v846_v8 = vpack.c.bf16 %v84_v5, %v82_v3  ;;  %v86_v10 = vld [vmem:[#allocation5 + $0x20] sm:$0xff]  ;;  %v88_v11 = vld [vmem:[#allocation5 + $0x30] sm:$0xff]  ;;  %v1156_v52 = vshrl.u32 %v116_v51, 7  ;;  %s786_s16 = sshll.u32 %s1047_s15, 4  ;;  %s787_s16 = int_to_ptr.vmem [resolvable:$true] %s786_s16 }
  0x4e   :  { %v848_v9 = vpack.c.bf16 %v89_v7, %v87_v6  ;;  %v91_v12 = vld [vmem:[#allocation5 + $0x48] sm:$0xff]  ;;  %845 = vmatprep.subr.bf16.mxu0 %v844_v4  ;;  %v93_v13 = vld [vmem:[#allocation5 + $0x58] sm:$0xff]  ;;  %v850_v14 = vpack.c.bf16 %v88_v11, %v86_v10  ;;  %v90_v16 = vld [vmem:[#allocation5 + $0x40] sm:$0xff]  ;;  %s1005_s17 = scalar_lea.vmem %s787_s16, 256  ;;  %p1010_p5 = scmp.lt.s32.totalorder %s787_s16, %s787_s16 }
  0x4f   :  { %847 = vmatpush1.bf16.msra.mxu0 %v846_v8  ;;  %v852_v15 = vpack.c.bf16 %v93_v13, %v91_v12  ;;  %v92_v17 = vld [vmem:[#allocation5 + $0x50] sm:$0xff]  ;;  %v95_v18 = vld [vmem:[#allocation5 + $0x68] sm:$0xff]  ;;  %v97_v19 = vld [vmem:[#allocation5 + $0x78] sm:$0xff]  ;;  %v1159_v53 = vsub.s32 0, %v1156_v52  ;;  %v1165_v55 = vsub.s32 1, %v1156_v52  ;;  %vm237_vm0 = vcmp.lt.s32.totalorder %v1156_v52, 1  ;;  %p1006_p4 = scmp.ne.s32.totalorder %s787_s16, %s1005_s17  ;;  %p1011_p6 = scmp.lt.s32.totalorder %s1005_s17, %s1005_s17 }
  0x50   :  { %849 = vmatprep.subr.bf16.mxu0 %v848_v9  ;;  %v854_v20 = vpack.c.bf16 %v92_v17, %v90_v16  ;;  %v856_v21 = vpack.c.bf16 %v97_v19, %v95_v18  ;;  %v94_v22 = vld [vmem:[#allocation5 + $0x60] sm:$0xff]  ;;  %v96_v23 = vld [vmem:[#allocation5 + $0x70] sm:$0xff]  ;;  %v99_v24 = vld [vmem:[#allocation5 + $0x88] sm:$0xff]  ;;  %vm433_vm1 = vcmp.lt.s32.totalorder %v1156_v52, 7  ;;  %vm231_vm2 = vcmp.eq.s32.totalorder %v1156_v52, 0 }
  0x51   :  { %v101_v25 = vld [vmem:[#allocation5 + $0x98] sm:$0xff]  ;;  %v98_v26 = vld [vmem:[#allocation5 + $0x80] sm:$0xff]  ;;  %v100_v27 = vld [vmem:[#allocation5 + $0x90] sm:$0xff]  ;;  %v858_v28 = vpack.c.bf16 %v96_v23, %v94_v22  ;;  %p1012_p7 = por %p1011_p6, %p1010_p5 }
  0x52   :  { %v103_v29 = vld [vmem:[#allocation5 + $0xa8] sm:$0xff]  ;;  %v105_v30 = vld [vmem:[#allocation5 + $0xb8] sm:$0xff]  ;;  %v860_v31 = vpack.c.bf16 %v101_v25, %v99_v24  ;;  %v102_v32 = vld [vmem:[#allocation5 + $0xa0] sm:$0xff]  ;;  %v862_v34 = vpack.c.bf16 %v100_v27, %v98_v26 }
  0x53   :  { %851 = vmatpush1.bf16.msra.mxu0 %v850_v14  ;;  %v104_v33 = vld [vmem:[#allocation5 + $0xb0] sm:$0xff]  ;;  %v107_v35 = vld [vmem:[#allocation5 + $0xc8] sm:$0xff]  ;;  %v864_v36 = vpack.c.bf16 %v105_v30, %v103_v29  ;;  %v109_v37 = vld [vmem:[#allocation5 + $0xd8] sm:$0xff]  ;;  %p1013_p8 = pnand %p1012_p7, %p1006_p4 }
  0x54   :  { %853 = vmatprep.subr.bf16.mxu0 %v852_v15  ;;  %v106_v38 = vld [vmem:[#allocation5 + $0xc0] sm:$0xff]  ;;  %v108_v39 = vld [vmem:[#allocation5 + $0xd0] sm:$0xff]  ;;  %v866_v40 = vpack.c.bf16 %v104_v33, %v102_v32  ;;  %v111_v41 = vld [vmem:[#allocation5 + $0xe8] sm:$0xff]  ;;  %v868_v43 = vpack.c.bf16 %v109_v37, %v107_v35 }
  0x55   :  { %v113_v42 = vld [vmem:[#allocation5 + $0xf8] sm:$0xff]  ;;  %v870_v44 = vpack.c.bf16 %v108_v39, %v106_v38  ;;  %v110_v46 = vld [vmem:[#allocation5 + $0xe0] sm:$0xff]  ;;  %v112_v47 = vld [vmem:[#allocation5 + $0xf0] sm:$0xff]  ;;  %v230_v39 = vadd.s32 8, %v1156_v52 }
  0x56   :  { %v872_v45 = vpack.c.bf16 %v113_v42, %v111_v41  ;;  %v874_v48 = vpack.c.bf16 %v112_v47, %v110_v46  ;;  %v1148_v49 = vld [vmem:[#allocation2] sm:$0xff]  ;;  %v1152_v50 = vld [vmem:[#allocation2 + $0x8] sm:$0xff]  ;;  %v901_v33 = vld [vmem:[#allocation8 + $0x40] sm:$0xff]  }
  0x57   :  { %855 = vmatpush1.bf16.msra.mxu0 %v854_v20  ;;  %v114_v54 = vld [vmem:[%s1434_s3] ss:$4 sm:$0x3]  ;;  %v800_v59 = vld [vmem:[%s1434_s3 + $0x1] ss:$4 sm:$0x3]  ;;  %822 = vmatprep.subr.bf16.mxu1 %v901_v33 }
  0x58   :  { %857 = vmatprep.subr.bf16.mxu0 %v856_v21  ;;  %v119_v56 = vrot.slane %v114_v54, %v1159_v53  ;;  %v123_v57 = vrot.slane %v114_v54, %v1165_v55  ;;  %v221_v7 = vrot.slane %v800_v59, %v1165_v55  ;;  %v904_v37 = vld [vmem:[#allocation8 + $0x8] sm:$0xff]   ;;  %v905_v38 = vld [vmem:[#allocation8 + $0x50] sm:$0xff]   ;;  %v907_v42 = vld [vmem:[#allocation8 + $0x58] sm:$0xff]   ;;  %vm428_vm3 = vcmp.eq.s32.totalorder %v230_v39, 15 }
  0x59   :  { %v910_v46 = vld [vmem:[#allocation8 + $0x20] sm:$0xff]   ;;  %v911_v47 = vld [vmem:[#allocation8 + $0x68] sm:$0xff]   ;;  %v913_v54 = vld [vmem:[#allocation8 + $0x70] sm:$0xff]  }
  0x5b   :  { %859 = vmatpush1.bf16.msra.mxu0 %v858_v28 }
  0x5c   :  { %861 = vmatprep.subr.bf16.mxu0 %v860_v31 }
  0x5f   :  { %863 = vmatpush1.bf16.msra.mxu0 %v862_v34  ;;  %v902_v34 = vld [vmem:[#allocation8] sm:$0xff]  }
  0x60   :  { %865 = vmatprep.subr.bf16.mxu0 %v864_v36  ;;  %823 = vmatpush3.bf16.msra.mxu1 %v902_v34  ;;  %v903_v36 = vld [vmem:[#allocation8 + $0x48] sm:$0xff]  }
  0x61   :  { %824 = vmatprep.subr.bf16.mxu1 %v903_v36 }
  0x63   :  { %867 = vmatpush1.bf16.msra.mxu0 %v866_v40  ;;  %v906_v40 = vld [vmem:[#allocation8 + $0x10] sm:$0xff]  }
  0x64   :  { %869 = vmatprep.subr.bf16.mxu0 %v868_v43  ;;  %825 = vmatpush3.bf16.msra.mxu1 %v904_v37  ;;  %v908_v43 = vld [vmem:[#allocation8 + $0x18] sm:$0xff]  }
  0x65   :  { %826 = vmatprep.subr.bf16.mxu1 %v905_v38 }
  0x67   :  { %871 = vmatpush1.bf16.msra.mxu0 %v870_v44 }
  0x68   :  { %873 = vmatprep.subr.bf16.mxu0 %v872_v45  ;;  %827 = vmatpush3.bf16.msra.mxu1 %v906_v40  ;;  %v909_v45 = vld [vmem:[#allocation8 + $0x60] sm:$0xff]  }
  0x69   :  { %828 = vmatprep.subr.bf16.mxu1 %v907_v42 }
  0x6b   :  { %875 = vmatpush1.bf16.msra.mxu0 %v874_v48  ;;  %v912_v48 = vld [vmem:[#allocation8 + $0x28] sm:$0xff]  }
  0x6c   :  { %829 = vmatpush3.bf16.msra.mxu1 %v908_v43 }
  0x6d   :  { %830 = vmatprep.subr.bf16.mxu1 %v909_v45 }
  0x6e   :  { %191 = vmatmul.mubr.f32.vlgmr.msra.gmra.mrb[0].mxu0 %v1148_v49 }
  0x6f   :  { %196 = vmatprep.mubr.f32.mxu0 %v1045_v0  ;;  %v217_v0 = vrot.slane %v800_v59, %v1159_v53 }
  0x70   :  { %831 = vmatpush3.bf16.msra.mxu1 %v910_v46 }
  0x71   :  { %832 = vmatprep.subr.bf16.mxu1 %v911_v47 }
  0x72   :  { %197 = vmatmul.mubr.f32.gmra.mrb[2].mxu0 %v1152_v50 }
  0x74   :  { %833 = vmatpush3.bf16.msra.mxu1 %v912_v48 }
  0x75   :  { %834 = vmatprep.subr.bf16.mxu1 %v913_v54 }
 0x141   :  { %v192_v58 = vpop.f32.mrb[0].mxu0 }
 0x142   :  { %v193_v60 = vadd.f32 %v192_v58, %v119_v56  ;;  %v194_v61 = vpop.f32.mrb[1].mxu0  ;;  %v916_v58 = vld [vmem:[#allocation8 + $0x38] sm:$0xff]  }
 0x143   :  { %v195_v62 = vadd.f32 %v194_v61, %v123_v57 }
 0x144   :  { %v876_v63 = vround.rtne.f32 %v193_v60 }
 0x145   :  { %v877_v1 = vround.rtne.f32 %v195_v62  ;;  %v198_v2 = vpop.f32.mrb[2].mxu0 }
 0x146   :  { %v209_v3 = vmax.f32 %v876_v63, 0.0  ;;  %v199_v4 = vadd.f32 %v198_v2, %v119_v56  ;;  %v200_v5 = vpop.f32.mrb[3].mxu0  ;;  %v914_v56 = vld [vmem:[#allocation8 + $0x30] sm:$0xff]  }
 0x147   :  { %v210_v6 = vmax.f32 %v877_v1, 0.0  ;;  %v201_v8 = vadd.f32 %v200_v5, %v123_v57  ;;  %v915_v57 = vld [vmem:[#allocation8 + $0x78] sm:$0xff]   ;;  %835 = vmatpush3.bf16.msra.mxu1 %v914_v56  ;;  %v1289_v5 = vand.u32 127, %v116_v51 }
 0x148   :  { %v1174_v9 = vmin.f32 %v217_v0, %v209_v3  ;;  %v878_v10 = vround.rtne.f32 %v199_v4  ;;  %836 = vmatprep.subr.bf16.mxu1 %v915_v57  ;;  %v265_v4 = vld [vmem:[#allocation7] ss:$8 sm:$0x3] }
 0x149   :  { %v879_v11 = vround.rtne.f32 %v201_v8  ;;  %v1178_v13 = vmin.f32 %v221_v7, %v210_v6  ;;  %v374_v8 = vld [vmem:[#allocation7 + $0x4] ss:$8 sm:$0x3]  ;;  %vm260_vm4 = vcmp.lt.s32.totalorder %v1289_v5, 8  ;;  %vm314_vm5 = vcmp.lt.s32.totalorder %v1289_v5, 120 }
 0x14a   :  { %v211_v12 = vmax.f32 %v878_v10, 0.0  ;;  %340 = vrot.lane.b32.xlu0 %v1174_v9, %s1040_s21  ;;  %v233_v17 = vrot.slane %v1174_v9, 7  ;;  %v429_v19 = vrot.slane %v1174_v9, 1  ;;  %v286_v10 = vld [vmem:[#allocation7 + $0x1] ss:$8 sm:$0x3] }
 0x14b   :  { %v212_v14 = vmax.f32 %v879_v11, 0.0  ;;  %v234_v21 = vrot.slane %v1178_v13, 7  ;;  %v430_v29 = vrot.slane %v1178_v13, 1  ;;  %837 = vmatpush3.bf16.msra.mxu1 %v916_v58  ;;  %v480_v11 = vld [vmem:[#allocation7 + $0x7] ss:$8 sm:$0x3] }
 0x14c   :  { %v1180_v15 = vmin.f32 %v217_v0, %v211_v12  ;;  %v353_v12 = vld [vmem:[#allocation7 + $0x3] ss:$8 sm:$0x3]  ;;  %v485_v51 = vrot.slane %v480_v11, %v1159_v53 }
 0x14d   :  { %v1182_v16 = vmin.f32 %v221_v7, %v212_v14  ;;  %v270_v14 = vrot.slane %v265_v4, %v1159_v53  ;;  %v362_v39 = vrot.slane %v353_v12, %v1165_v55 }
 0x14e   :  { %342 = vrot.lane.b32.xlu1 %v1180_v15, %s1040_s21  ;;  %394 = vrot.lane.b32.xlu0 %v1174_v9, %s1046_s28  ;;  %v235_v18 = vrot.slane %v1180_v15, 7  ;;  %v431_v20 = vrot.slane %v1180_v15, 1 }
 0x14f   :  { %v236_v22 = vrot.slane %v1182_v16, 7  ;;  %v432_v23 = vrot.slane %v1182_v16, 1 }
 0x150   :  { %v1199_v24 = vsel %vm237_vm0, %v233_v17, %v235_v18  ;;  %v1203_v25 = vsel %vm433_vm1, %v429_v19, %v431_v20  ;;  %v240_v26 = vsel %vm237_vm0, %v235_v18, %v233_v17  ;;  %v436_v27 = vsel %vm433_vm1, %v431_v20, %v429_v19  ;;  %v320_v18 = vld [vmem:[#allocation7 + $0x2] ss:$8 sm:$0x3] }
 0x151   :  { %v1211_v28 = vsel %vm237_vm0, %v234_v21, %v236_v22  ;;  %v241_v30 = vsel %vm237_vm0, %v236_v22, %v234_v21  ;;  %v1222_v31 = vsel %vm433_vm1, %v430_v29, %v432_v23  ;;  %v437_v32 = vsel %vm433_vm1, %v432_v23, %v430_v29  ;;  %v407_v23 = vld [vmem:[#allocation7 + $0x5] ss:$8 sm:$0x3] }
 0x152   :  { %396 = vrot.lane.b32.xlu1 %v1180_v15, %s1046_s28  ;;  %344 = vrot.lane.b32.xlu0 %v1178_v13, %s1040_s21  ;;  %v1241_v35 = vsel %vm231_vm2, 0.0, %v240_v26  ;;  %v1254_v41 = vsel %vm231_vm2, 0.0, %v241_v30  ;;  %v1261_v44 = vsel %vm428_vm3, 0.0, %v436_v27  ;;  %v1272_v52 = vsel %vm428_vm3, 0.0, %v437_v32 }
 0x153   :  { %v274_v17 = vrot.slane %v265_v4, %v1165_v55  ;;  %v379_v19 = vrot.slane %v374_v8, %v1159_v53  ;;  %v383_v20 = vrot.slane %v374_v8, %v1165_v55  ;;  %v291_v21 = vrot.slane %v286_v10, %v1159_v53 }
 0x154   :  { %v295_v22 = vrot.slane %v286_v10, %v1165_v55  ;;  %v1302_v29 = vrot.slane %v480_v11, %v1165_v55  ;;  %v358_v30 = vrot.slane %v353_v12, %v1159_v53  ;;  %v325_v37 = vrot.slane %v320_v18, %v1159_v53 }
 0x155   :  { %v329_v38 = vrot.slane %v320_v18, %v1165_v55  ;;  %v1314_v40 = vrot.slane %v407_v23, %v1159_v53  ;;  %v1317_v42 = vrot.slane %v407_v23, %v1165_v55  ;;  %v300_v43 = vmul.f32 %v291_v21, %v1199_v24 }
 0x156   :  { %346 = vrot.lane.b32.xlu1 %v1182_v16, %s1040_s21  ;;  %398 = vrot.lane.b32.xlu0 %v1178_v13, %s1046_s28  ;;  %v301_v45 = vmul.f32 %v295_v22, %v1211_v28  ;;  %v388_v48 = vmul.f32 %v379_v19, %v1180_v15  ;;  %v389_v54 = vmul.f32 %v383_v20, %v1182_v16 }
 0x157   :  { %v298_v15 = vmul.f32 %v291_v21, %v1241_v35 }
 0x15a   :  { %400 = vrot.lane.b32.xlu1 %v1182_v16, %s1046_s28  ;;  %252 = vrot.lane.b32.xlu0 %v1199_v24, %s1040_s21  ;;  %v299_v16 = vmul.f32 %v295_v22, %v1254_v41 }
 0x15e   :  { %308 = vrot.lane.b32.xlu1 %v1199_v24, %s1046_s28  ;;  %446 = vrot.lane.b32.xlu0 %v1203_v25, %s1040_s21 }
 0x162   :  { %256 = vrot.lane.b32.xlu1 %v1211_v28, %s1040_s21  ;;  %250 = vrot.lane.b32.xlu0 %v1241_v35, %s1040_s21 }
 0x166   :  { %312 = vrot.lane.b32.xlu1 %v1211_v28, %s1046_s28  ;;  %306 = vrot.lane.b32.xlu0 %v1241_v35, %s1046_s28 }
 0x16a   :  { %254 = vrot.lane.b32.xlu1 %v1254_v41, %s1040_s21  ;;  %310 = vrot.lane.b32.xlu0 %v1254_v41, %s1046_s28 }
 0x16e   :  { %448 = vrot.lane.b32.xlu1 %v1261_v44, %s1040_s21  ;;  %450 = vrot.lane.b32.xlu0 %v1222_v31, %s1040_s21 }
 0x172   :  { %502 = vrot.lane.b32.xlu1 %v1261_v44, %s1046_s28  ;;  %500 = vrot.lane.b32.xlu0 %v1203_v25, %s1046_s28 }
 0x176   :  { %452 = vrot.lane.b32.xlu1 %v1272_v52, %s1040_s21  ;;  %504 = vrot.lane.b32.xlu0 %v1222_v31, %s1046_s28 }
 0x17a   :  { %506 = vrot.lane.b32.xlu1 %v1272_v52, %s1046_s28 }
 0x1bc   :  { %v341_v59 = vpop.permute.xlu0 %340 }
 0x1c0   :  { %v343_v60 = vpop.permute.xlu1 %342  ;;  %v1280_v61 = vpop.permute.xlu0 %394 }
 0x1c4   :  { %v1282_v62 = vpop.permute.xlu1 %396  ;;  %v345_v63 = vpop.permute.xlu0 %344 }
 0x1c5   :  { %v348_v10 = vsel %vm260_vm4, %v341_v59, %v345_v63 }
 0x1c8   :  { %v347_v0 = vpop.permute.xlu1 %346  ;;  %v1284_v1 = vpop.permute.xlu0 %398 }
 0x1c9   :  { %v349_v56 = vsel %vm260_vm4, %v343_v60, %v347_v0  ;;  %v351_v57 = vsel %vm260_vm4, %v347_v0, %v343_v60  ;;  %v350_v60 = vsel %vm260_vm4, %v345_v63, %v341_v59 }
 0x1ca   :  { %v367_v0 = vmul.f32 %v358_v30, %v351_v57  ;;  %v368_v11 = vmul.f32 %v362_v39, %v349_v56 }
 0x1cc   :  { %v1286_v2 = vpop.permute.xlu1 %400  ;;  %v253_v3 = vpop.permute.xlu0 %252 }
 0x1d0   :  { %v309_v6 = vpop.permute.xlu1 %308  ;;  %v1291_v7 = vpop.permute.xlu0 %446 }
 0x1d4   :  { %v257_v26 = vpop.permute.xlu1 %256  ;;  %v251_v27 = vpop.permute.xlu0 %250 }
 0x1d5   :  { %v262_v32 = vsel %vm260_vm4, %v253_v3, %v257_v26  ;;  %v264_v33 = vsel %vm260_vm4, %v257_v26, %v253_v3 }
 0x1d6   :  { %v279_v34 = vmul.f32 %v270_v14, %v264_v33  ;;  %v280_v36 = vmul.f32 %v274_v17, %v262_v32 }
 0x1d8   :  { %v313_v46 = vpop.permute.xlu1 %312  ;;  %v307_v47 = vpop.permute.xlu0 %306  ;;  %v304_v3 = vadd.f32 %v300_v43, %v279_v34  ;;  %v305_v28 = vadd.f32 %v301_v45, %v280_v36  ;;  %v386_v36 = vmul.f32 %v379_v19, %v1174_v9  ;;  %v387_v43 = vmul.f32 %v383_v20, %v1178_v13 }
 0x1d9   :  { %v316_v58 = vsel %vm314_vm5, %v309_v6, %v313_v46  ;;  %v318_v24 = vsel %vm314_vm5, %v313_v46, %v309_v6  ;;  %v402_v9 = vsel %vm314_vm5, %v1280_v61, %v1284_v1  ;;  %v404_v13 = vsel %vm314_vm5, %v1284_v1, %v1280_v61 }
 0x1da   :  { %v334_v4 = vmul.f32 %v325_v37, %v316_v58  ;;  %v335_v8 = vmul.f32 %v329_v38, %v318_v24 }
 0x1dc   :  { %v338_v12 = vadd.f32 %v334_v4, %v304_v3  ;;  %v339_v18 = vadd.f32 %v335_v8, %v305_v28  ;;  %v255_v23 = vpop.permute.xlu1 %254  ;;  %v311_v6 = vpop.permute.xlu0 %310  ;;  %v492_v3 = vmul.f32 %v485_v51, %v1203_v25  ;;  %v365_v28 = vmul.f32 %v358_v30, %v350_v60 }
 0x1dd   :  { %v261_v26 = vsel %vm260_vm4, %v251_v27, %v255_v23  ;;  %v263_v35 = vsel %vm260_vm4, %v255_v23, %v251_v27  ;;  %v315_v41 = vsel %vm314_vm5, %v307_v47, %v311_v6  ;;  %v317_v21 = vsel %vm314_vm5, %v311_v6, %v307_v47  ;;  %v459_v27 = vld [vmem:[#allocation7 + $0x6] ss:$8 sm:$0x3]  ;;  %v801_v23 = vld [vmem:[%s1434_s3 + $0x2] ss:$4 sm:$0x3] }
 0x1de   :  { %v371_v22 = vadd.f32 %v367_v0, %v338_v12  ;;  %v372_v59 = vadd.f32 %v368_v11, %v339_v18  ;;  %v277_v63 = vmul.f32 %v270_v14, %v263_v35  ;;  %v278_v32 = vmul.f32 %v274_v17, %v261_v26 }
 0x1df   :  { %v332_v33 = vmul.f32 %v325_v37, %v315_v41  ;;  %v333_v34 = vmul.f32 %v329_v38, %v317_v21  ;;  %v494_v47 = vmul.f32 %v485_v51, %v1261_v44  ;;  %v366_v14 = vmul.f32 %v362_v39, %v348_v10 }
 0x1e0   :  { %v302_v45 = vadd.f32 %v298_v15, %v277_v63  ;;  %v303_v46 = vadd.f32 %v299_v16, %v278_v32  ;;  %v449_v56 = vpop.permute.xlu1 %448  ;;  %v451_v57 = vpop.permute.xlu0 %450  ;;  %v392_v58 = vadd.f32 %v388_v48, %v371_v22  ;;  %v393_v24 = vadd.f32 %v389_v54, %v372_v59  ;;  %v513_v48 = vld [vmem:[#allocation7 + $0x10] ss:$8 sm:$0x3] }
 0x1e1   :  { %v403_v25 = vsel %vm314_vm5, %v1282_v62, %v1286_v2  ;;  %v405_v44 = vsel %vm314_vm5, %v1286_v2, %v1282_v62  ;;  %v464_v20 = vrot.slane %v459_v27, %v1159_v53  ;;  %v468_v51 = vrot.slane %v459_v27, %v1165_v55 }
 0x1e2   :  { %v336_v17 = vadd.f32 %v332_v33, %v302_v45  ;;  %v337_v19 = vadd.f32 %v333_v34, %v303_v46  ;;  %v454_v61 = vsel %vm260_vm4, %v1291_v7, %v451_v57  ;;  %v456_v1 = vsel %vm260_vm4, %v451_v57, %v1291_v7 }
 0x1e3   :  { %v493_v62 = vmul.f32 %v1302_v29, %v1222_v31  ;;  %v495_v2 = vmul.f32 %v1302_v29, %v1272_v52  ;;  %v419_v54 = vmul.f32 %v1314_v40, %v402_v9  ;;  %v420_v4 = vmul.f32 %v1317_v42, %v404_v13 }
 0x1e4   :  { %v369_v30 = vadd.f32 %v365_v28, %v336_v17  ;;  %v370_v37 = vadd.f32 %v366_v14, %v337_v19  ;;  %v503_v38 = vpop.permute.xlu1 %502  ;;  %v501_v39 = vpop.permute.xlu0 %500  ;;  %v421_v8 = vmul.f32 %v1314_v40, %v403_v25  ;;  %v422_v15 = vmul.f32 %v1317_v42, %v405_v44 }
 0x1e5   :  { %v471_v7 = vmul.f32 %v464_v20, %v456_v1  ;;  %v472_v60 = vmul.f32 %v468_v51, %v454_v61  ;;  %v518_v0 = vrot.slane %v513_v48, %v1159_v53  ;;  %v522_v11 = vrot.slane %v513_v48, %v1165_v55 }
 0x1e6   :  { %v390_v16 = vadd.f32 %v386_v36, %v369_v30  ;;  %v391_v10 = vadd.f32 %v387_v43, %v370_v37  ;;  %v425_v52 = vadd.f32 %v421_v8, %v392_v58  ;;  %v426_v29 = vadd.f32 %v422_v15, %v393_v24 }
 0x1e7   :  { %v539_v63 = vrot.slane %v801_v23, %v1159_v53  ;;  %v543_v34 = vrot.slane %v801_v23, %v1165_v55 }
 0x1e8   :  { %v423_v31 = vadd.f32 %v419_v54, %v390_v16  ;;  %v424_v12 = vadd.f32 %v420_v4, %v391_v10  ;;  %v453_v18 = vpop.permute.xlu1 %452  ;;  %v505_v40 = vpop.permute.xlu0 %504 }
 0x1e9   :  { %v455_v42 = vsel %vm260_vm4, %v449_v56, %v453_v18  ;;  %v457_v6 = vsel %vm260_vm4, %v453_v18, %v449_v56  ;;  %v508_v26 = vsel %vm314_vm5, %v501_v39, %v505_v40  ;;  %v510_v35 = vsel %vm314_vm5, %v505_v40, %v501_v39 }
 0x1ea   :  { %v475_v41 = vadd.f32 %v471_v7, %v423_v31  ;;  %v476_v21 = vadd.f32 %v472_v60, %v424_v12  ;;  %v473_v22 = vmul.f32 %v464_v20, %v457_v6  ;;  %v474_v59 = vmul.f32 %v468_v51, %v455_v42 }
 0x1eb   :  { %v525_v32 = vmul.f32 %v518_v0, %v508_v26  ;;  %v526_v33 = vmul.f32 %v522_v11, %v510_v35 }
 0x1ec   :  { %v477_v36 = vadd.f32 %v473_v22, %v425_v52  ;;  %v478_v43 = vadd.f32 %v474_v59, %v426_v29  ;;  %v496_v45 = vadd.f32 %v492_v3, %v475_v41  ;;  %v497_v46 = vadd.f32 %v493_v62, %v476_v21  ;;  %v507_v56 = vpop.permute.xlu1 %506  ;;  %v802_v3 = vld [vmem:[%s1434_s3 + $0x3] ss:$4 sm:$0x3]  ;;  %v821_v59 = vld [vmem:[%s1436_s5 + $0x2] ss:$0 sm:$0xff] }
 0x1ed   :  { %v509_v27 = vsel %vm314_vm5, %v503_v38, %v507_v56  ;;  %v511_v57 = vsel %vm314_vm5, %v507_v56, %v503_v38  ;;  %v564_v5 = vrot.slane %v802_v3, %v1159_v53  ;;  %v568_v61 = vrot.slane %v802_v3, %v1165_v55  ;;  %v820_v53 = vld [vmem:[%s1436_s5 + $0x1] ss:$0 sm:$0xff] }
 0x1ee   :  { %v529_v58 = vadd.f32 %v525_v32, %v496_v45  ;;  %v530_v24 = vadd.f32 %v526_v33, %v497_v46  ;;  %v498_v28 = vadd.f32 %v494_v47, %v477_v36  ;;  %v499_v14 = vadd.f32 %v495_v2, %v478_v43 }
 0x1ef   :  { %v527_v9 = vmul.f32 %v518_v0, %v509_v27  ;;  %v528_v13 = vmul.f32 %v522_v11, %v511_v57  ;;  %v762_v55 = vmul.f32 %v820_v53, %v1148_v49  ;;  %v763_v10 = vmul.f32 %v820_v53, %v1152_v50  ;;  %v803_v0 = vld [vmem:[%s1436_s5] ss:$0 sm:$0xff] }
 0x1f0   :  { %v546_v17 = vadd.f32 %v539_v63, %v529_v58  ;;  %v547_v19 = vadd.f32 %v543_v34, %v530_v24 }
 0x1f1   :  { %v531_v25 = vadd.f32 %v527_v9, %v498_v28  ;;  %v532_v44 = vadd.f32 %v528_v13, %v499_v14  ;;  %v886_v7 = vround.rtne.f32 %v762_v55  ;;  %v887_v31 = vround.rtne.f32 %v763_v10 }
 0x1f2   :  { %v880_v20 = vround.rtne.f32 %v546_v17  ;;  %v881_v51 = vround.rtne.f32 %v547_v19 }
 0x1f3   :  { %v548_v30 = vadd.f32 %v539_v63, %v531_v25  ;;  %v549_v37 = vadd.f32 %v543_v34, %v532_v44  ;;  %v766_v29 = vmax.f32 %v886_v7, -128.0  ;;  %v767_v42 = vmax.f32 %v887_v31, -128.0 }
 0x1f4   :  { %v556_v47 = vmax.f32 %v880_v20, 0.0  ;;  %v557_v39 = vmax.f32 %v881_v51, 0.0 }
 0x1f5   :  { %v882_v1 = vround.rtne.f32 %v548_v30  ;;  %v883_v38 = vround.rtne.f32 %v549_v37  ;;  %v768_v49 = vmin.f32 %v766_v29, 127.0  ;;  %v769_v41 = vmin.f32 %v767_v42, 127.0 }
 0x1f6   :  { %v572_v2 = vmin.f32 %v568_v61, %v557_v39  ;;  %v571_v4 = vmin.f32 %v564_v5, %v556_v47 }
 0x1f7   :  { %v558_v48 = vmax.f32 %v882_v1, 0.0  ;;  %v559_v62 = vmax.f32 %v883_v38, 0.0 }
 0x1f9   :  { %v574_v54 = vmin.f32 %v568_v61, %v559_v62  ;;  %v573_v8 = vmin.f32 %v564_v5, %v558_v48 }
 0x1fb   :  { %v576_v15 = vpack.c.bf16 %v574_v54, %v572_v2  ;;  %v575_v16 = vpack.c.bf16 %v573_v8, %v571_v4 }
 0x1fd   :  { %742 = vmatprep.mubr.bf16.mxu1 %v576_v15 }
 0x1fe   :  { %743 = vmatmul.mubr.bf16.vlgmr.msra.gmra.mrb[0].mxu1 %v575_v16 }
 0x2d1   :  { %v838_v60 = vpop.f32.mrb[0].mxu1 }
 0x2d2   :  { %v839_v11 = vpop.f32.mrb[1].mxu1 }
 0x2d3   :  { %v840_v12 = vadd.f32 %v839_v11, %v838_v60  ;;  %v841_v18 = vpop.f32.mrb[2].mxu1 }
 0x2d4   :  { %v842_v52 = vpop.f32.mrb[3].mxu1 }
 0x2d5   :  { %v745_v23 = vadd.f32 %v840_v12, %v803_v0  ;;  %v843_v40 = vadd.f32 %v842_v52, %v841_v18 }
 0x2d7   :  { %v884_v6 = vround.rtne.f32 %v745_v23  ;;  %v748_v26 = vadd.f32 %v843_v40, %v803_v0 }
 0x2d9   :  { %v753_v35 = vmax.f32 %v884_v6, -128.0  ;;  %v885_v50 = vround.rtne.f32 %v748_v26 }
 0x2db   :  { %v755_v21 = vmin.f32 %v753_v35, 127.0  ;;  %v754_v22 = vmax.f32 %v885_v50, -128.0 }
 0x2dd   :  { %v770_v63 = vadd.f32 %v768_v49, %v755_v21  ;;  %v756_v32 = vmin.f32 %v754_v22, 127.0 }
 0x2df   :  { %v771_v33 = vadd.f32 %v769_v41, %v756_v32  ;;  %v777_v34 = vmul.f32 %v821_v59, %v770_v63 }
 0x2e1   :  { %v778_v36 = vmul.f32 %v821_v59, %v771_v33  ;;  %779 = vst [vmem:[#allocation10] sm:$0xff] %v777_v34 }
 0x2e3   :  { %780 = vst [vmem:[#allocation10 + $0x8] sm:$0xff] %v778_v36 }
 0x2e4   :  { %1016 = shalt.err (!%p1013_p8)
}
 0x2e5   :  { %s1017_s5 = scalar_lea.hbm %s1437_s6, 256 }
 0x2e6   :  { %p1018_p9 = scmp.ne.s32.totalorder %s1437_s6, %s1017_s5  ;;  %p1021_p10 = scmp.lt.u32.totalorder %s1017_s5, %s1437_s6 }
 0x2e8   :  { %p1023_p11 = pnand %p1021_p10, %p1018_p9 }
 0x2ea   :  { %1026 = shalt.err (!%p1023_p11)
}
 0x2eb   :  { %792 = dma.vmem_to_hbm [thread:$0]  %s787_s16, 256, %s1437_s6, [#allocation4], %s1039_s1, %s1039_s1, %s1040_s21  }
 0x2ec   :  { %1033 = dma.done.wait [#allocation4], 256  }
 0x2ed   :  { %1034 = vsyncadd [#allocation4], 4294967040 }
 0x2ee   :  { %796 = vsyncpa [#allocation3], 1 }
 0x2ef   :  { %797 = vsyncpa [#allocation6], 1 }
 0x2f0   :  { %798 = vsyncpa [#allocation9], 1 }
 0x2f1   :  { %799 = vsyncpa [#allocation4], 1 }

</bundles_post_ra>
